<compile_context>
chip_gen: v6e
topology: v6e:2x2x1
jax: 0.10.0
libtpu: 0.0.40
codegen_flags: <defaults>
</compile_context>

<pallas_src>
import math

import jax
import jax.numpy as jnp
from jax.experimental import pallas as pl
from jax.experimental.pallas import tpu as pltpu

IMG_NET_MEAN = jnp.array([0.485, 0.456, 0.406], dtype=jnp.float32)
IMG_NET_STD = jnp.array([0.229, 0.224, 0.225], dtype=jnp.float32)


def _loss_cnt_kernel(x_ref, xh_ref, w_ref, out_ref, acc_ref):
    """Streams sum((x - x_hat)^2) per row into a tiny (rows, 1) accumulator;
    the per-channel 1/std^2 weight (with the mean scale folded in) and the
    final cross-row reduce happen once on the last grid step."""
    i = pl.program_id(1)

    @pl.when(i == 0)
    def _():
        acc_ref[...] = jnp.zeros_like(acc_ref)

    d = x_ref[...].astype(jnp.float32) - xh_ref[...].astype(jnp.float32)
    # Per-row lane reduce: VALU adds across vreg columns + one small XLU
    # reduce; accumulator RMW is (rows, 1) instead of a multi-MiB block.
    acc_ref[...] += jnp.sum(d * d, axis=1, keepdims=True)

    @pl.when(i == pl.num_programs(1) - 1)
    def _():
        total = jnp.sum(acc_ref[...] * w_ref[...])     # weight + mean folded in
        out_ref[...] = jnp.zeros_like(out_ref) + total  # replicate scalar


def _cdiv(a, b):
    return -(-a // b)


def _round_up(a, b):
    return _cdiv(a, b) * b


def loss_eg_forward(x, x_hat, r_x_hat, e_hat=None, W_i=None):
    """Pallas implementation of LossEG.forward with feed_forward=True."""
    # TODO(synk): loss_mch (L1(W_i, e_hat) * config.LOSS_MCH_WEIGHT) is not
    # implemented — match_loss is False in the default (feed_forward=True)
    # configuration and config.LOSS_MCH_WEIGHT is undefined in the reference.
    N, C, H, W = x.shape
    assert C == 3, "ImageNet normalization expects 3 channels"
    S = H * W
    R = N * C
    itemsize = jnp.dtype(x.dtype).itemsize

    # ---- layout: fold spatial columns into rows so rows % sublane_tile == 0 --
    sub = max(8, 32 // itemsize)            # 8 for f32, 16 for bf16, 32 for i8
    k = sub // math.gcd(R, sub)             # smallest fold making R*k % sub == 0
    Rk = R * k

    # ---- tile / grid selection (exact VMEM accounting, sublane-exact rows) ---
    VMEM_LIMIT = 32 << 20                   # explicit scoped limit (all chips)
    TARGET_BLOCK_ELEMS = 1 << 20            # ~4 MiB f32 / 2 MiB bf16 per block
    tile_cap = max(128, (TARGET_BLOCK_ELEMS // Rk) // 128 * 128)

    lanes_needed = _cdiv(S, k)              # lanes per folded row (unpadded)
    # 2-way core split whenever there is enough work: worth ~2x on 2-TC chips
    # (v7x); on 1-TC chips (v5e/v6e) the extra "parallel" axis is a negligible
    # sequential loop.
    ncs = 2 if lanes_needed >= 256 else 1
    per_core = _cdiv(lanes_needed, ncs)
    steps = max(1, _cdiv(per_core, tile_cap))
    if steps == 1 and per_core >= 256:
        steps = 2                            # guarantee DMA/compute overlap
    tile_s = _round_up(_cdiv(per_core, steps), 128)
    L = ncs * steps * tile_s                 # padded lanes per folded row
    S_pad = L * k

    # ---- prepare operands ----------------------------------------------------
    x2 = x.reshape(R, S)
    xh2 = x_hat.reshape(R, S)
    if S_pad != S:
        # Identical zero-pad on both inputs: padded diff is exactly 0, so it
        # contributes nothing to the sum (mean divisor below uses the real R*S).
        pad = ((0, 0), (0, S_pad - S))
        x2 = jnp.pad(x2, pad)
        xh2 = jnp.pad(xh2, pad)
    x2 = x2.reshape(Rk, L)
    xh2 = xh2.reshape(Rk, L)

    # Per-row weight: the ImageNet mean cancels in (x - x_hat); only 1/std^2
    # remains.  The MSE 1/(N*C*H*W) mean scale is folded in here for free.
    inv_std2 = 1.0 / (IMG_NET_STD * IMG_NET_STD)                 # (3,)
    w_col = (jnp.repeat(jnp.tile(inv_std2, N), k) / jnp.float32(R * S)
             ).reshape(Rk, 1).astype(jnp.float32)

    grid = (ncs, steps)
    out = pl.pallas_call(
        _loss_cnt_kernel,
        out_shape=jax.ShapeDtypeStruct((ncs, 8, 128), jnp.float32),
        grid_spec=pltpu.PrefetchScalarGridSpec(
            num_scalar_prefetch=0,
            grid=grid,
            in_specs=[
                pl.BlockSpec((Rk, tile_s), lambda c, i: (0, c * steps + i)),  # x
                pl.BlockSpec((Rk, tile_s), lambda c, i: (0, c * steps + i)),  # x_hat
                pl.BlockSpec((Rk, 1), lambda c, i: (0, 0)),                   # weight
            ],
            out_specs=pl.BlockSpec((1, 8, 128), lambda c, i: (c, 0, 0)),
            scratch_shapes=[pltpu.VMEM((Rk, 1), jnp.float32)],                # tiny acc
        ),
        compiler_params=pltpu.CompilerParams(
            dimension_semantics=("parallel", "arbitrary"),
            vmem_limit_bytes=VMEM_LIMIT,
        ),
        cost_estimate=pl.CostEstimate(
            flops=int(3 * Rk * L),
            transcendentals=0,
            bytes_accessed=int(2 * Rk * L * itemsize),
        ),
    )(x2, xh2, w_col)

    cnt = jnp.sum(out[:, 0, 0])                      # mean scale already applied
    adv = -jnp.mean(r_x_hat.astype(jnp.float32))     # -r_x_hat.mean()
    return (cnt + adv).reshape(1)


def _reference(x, x_hat, r_x_hat):
    m = IMG_NET_MEAN.reshape(1, 3, 1, 1)
    s = IMG_NET_STD.reshape(1, 3, 1, 1)
    xn = (x - m) / s
    xhn = (x_hat - m) / s
    cnt = jnp.mean((xn - xhn) ** 2)
    adv = -jnp.mean(r_x_hat)
    return (cnt + adv).reshape(1)


if __name__ == "__main__":
    key = jax.random.PRNGKey(0)
    k1, k2, k3, k4, k5 = jax.random.split(key, 5)

    N, C, H, W = 2, 3, 16, 16
    x = jax.random.uniform(k1, (N, C, H, W), dtype=jnp.float32)
    x_hat = jax.random.uniform(k2, (N, C, H, W), dtype=jnp.float32)
    r_x_hat = jax.random.normal(k3, (N, 1), dtype=jnp.float32)
    # e_hat / W_i are accepted but unused (match_loss is off, as in the default
    # feed_forward=True construction of LossEG).
    e_hat = jax.random.normal(k4, (N, 32, 1), dtype=jnp.float32)
    W_i = jax.random.normal(k5, (32, N), dtype=jnp.float32)

    out = loss_eg_forward(x, x_hat, r_x_hat, e_hat, W_i)
    out = jax.block_until_ready(out)

    ref = _reference(x, x_hat, r_x_hat)
    assert out.shape == (1,)
    assert jnp.allclose(out, ref, rtol=1e-5, atol=1e-5), (out, ref)
    print("KERNEL_OK")
</pallas_src>

<mosaic_0001>
module attributes {stable_mosaic.version = 11 : i64} {
  func.func @_loss_cnt_kernel(%arg0: i32, %arg1: i32, %arg2: memref<24x128xf32, #tpu.memory_space<vmem>>, %arg3: memref<24x128xf32, #tpu.memory_space<vmem>>, %arg4: memref<24x1xf32, #tpu.memory_space<vmem>>, %arg5: memref<1x8x128xf32, #tpu.memory_space<vmem>>, %arg6: memref<24x1xf32, #tpu.memory_space<vmem>>) attributes {dimension_semantics = [#tpu.dimension_semantics<parallel>, #tpu.dimension_semantics<arbitrary>], iteration_bounds = array<i64: 1, 1>, scalar_prefetch = 0 : i64, scratch_operands = 1 : i64, tpu.core_type = #tpu.core_type<tc>, window_params = [{transform_indices = @transform_0, window_bounds = array<i64: 24, 128>}, {transform_indices = @transform_1, window_bounds = array<i64: 24, 128>}, {pipeline_mode = #tpu.pipeline_mode<synchronous>, transform_indices = @transform_2, window_bounds = array<i64: 24, 1>}, {transform_indices = @transform_3, window_bounds = array<i64: 1, 8, 128>}]} {
    %c0_i32 = arith.constant 0 : i32
    %0 = arith.cmpi eq, %arg1, %c0_i32 : i32
    %1 = arith.extui %0 : i1 to i32
    %c0_i32_0 = arith.constant 0 : i32
    %2 = arith.cmpi ne, %1, %c0_i32_0 : i32
    scf.if %2 {
      %cst_10 = arith.constant 0.000000e+00 : f32
      %15 = vector.broadcast %cst_10 : f32 to vector<24x1xf32>
      %c0_11 = arith.constant 0 : index
      %c0_12 = arith.constant 0 : index
      %16 = vector.load %arg6[%c0_11, %c0_12] : memref<24x1xf32, #tpu.memory_space<vmem>>, vector<24x1xf32>
      tpu.vector_store %arg6[%c0_11, %c0_12], %15 {strides = array<i32>} : memref<24x1xf32, #tpu.memory_space<vmem>>, vector<24x1xf32>,
    } else {
    }
    %c0 = arith.constant 0 : index
    %c0_1 = arith.constant 0 : index
    %3 = vector.load %arg2[%c0, %c0_1] : memref<24x128xf32, #tpu.memory_space<vmem>>, vector<24x128xf32>
    %c0_2 = arith.constant 0 : index
    %c0_3 = arith.constant 0 : index
    %4 = vector.load %arg3[%c0_2, %c0_3] : memref<24x128xf32, #tpu.memory_space<vmem>>, vector<24x128xf32>
    %5 = arith.subf %3, %4 : vector<24x128xf32>
    %c0_4 = arith.constant 0 : index
    %c0_5 = arith.constant 0 : index
    %6 = vector.load %arg6[%c0_4, %c0_5] : memref<24x1xf32, #tpu.memory_space<vmem>>, vector<24x1xf32>
    %7 = arith.mulf %5, %5 : vector<24x128xf32>
    %cst = arith.constant dense<0.000000e+00> : vector<24xf32>
    %8 = vector.multi_reduction <add>, %7, %cst [1] : vector<24x128xf32> to vector<24xf32>
    %9 = vector.shape_cast %8 : vector<24xf32> to vector<24x1xf32>
    %10 = arith.addf %6, %9 : vector<24x1xf32>
    %c0_6 = arith.constant 0 : index
    %c0_7 = arith.constant 0 : index
    %11 = vector.load %arg6[%c0_6, %c0_7] : memref<24x1xf32, #tpu.memory_space<vmem>>, vector<24x1xf32>
    tpu.vector_store %arg6[%c0_6, %c0_7], %10 {strides = array<i32>} : memref<24x1xf32, #tpu.memory_space<vmem>>, vector<24x1xf32>,
    %c0_i32_8 = arith.constant 0 : i32
    %12 = arith.cmpi eq, %arg1, %c0_i32_8 : i32
    %13 = arith.extui %12 : i1 to i32
    %c0_i32_9 = arith.constant 0 : i32
    %14 = arith.cmpi ne, %13, %c0_i32_9 : i32
    scf.if %14 {
      %c0_10 = arith.constant 0 : index
      %c0_11 = arith.constant 0 : index
      %15 = vector.load %arg6[%c0_10, %c0_11] : memref<24x1xf32, #tpu.memory_space<vmem>>, vector<24x1xf32>
      %c0_12 = arith.constant 0 : index
      %c0_13 = arith.constant 0 : index
      %16 = vector.load %arg4[%c0_12, %c0_13] : memref<24x1xf32, #tpu.memory_space<vmem>>, vector<24x1xf32>
      %17 = arith.mulf %15, %16 : vector<24x1xf32>
      %18 = vector.shape_cast %17 : vector<24x1xf32> to vector<1x24x1xf32>
      %cst_14 = arith.constant dense<0.000000e+00> : vector<1xf32>
      %19 = vector.multi_reduction <add>, %18, %cst_14 [1, 2] : vector<1x24x1xf32> to vector<1xf32>
      %20 = vector.shape_cast %19 : vector<1xf32> to vector<1x1x1xf32>
      %21 = vector.extract %20[0, 0, 0] : f32 from vector<1x1x1xf32>
      %cst_15 = arith.constant 0.000000e+00 : f32
      %22 = vector.broadcast %cst_15 : f32 to vector<1x8x128xf32>
      %23 = vector.broadcast %21 : f32 to vector<1x8x128xf32>
      %24 = arith.addf %22, %23 : vector<1x8x128xf32>
      %c0_16 = arith.constant 0 : index
      %c0_17 = arith.constant 0 : index
      %c0_18 = arith.constant 0 : index
      %25 = vector.load %arg5[%c0_16, %c0_17, %c0_18] : memref<1x8x128xf32, #tpu.memory_space<vmem>>, vector<1x8x128xf32>
      tpu.vector_store %arg5[%c0_16, %c0_17, %c0_18], %24 {strides = array<i32>} : memref<1x8x128xf32, #tpu.memory_space<vmem>>, vector<1x8x128xf32>,
    } else {
    }
    return
  }
  func.func @transform_0(%arg0: i32, %arg1: i32) -> (i32, i32) {
    %c1_i32 = arith.constant 1 : i32
    %0 = arith.muli %arg0, %c1_i32 : i32
    %1 = arith.addi %0, %arg1 : i32
    %c0_i32 = arith.constant 0 : i32
    %c0_i32_0 = arith.constant 0 : i32
    return %c0_i32, %1 : i32, i32
  }
  func.func @transform_1(%arg0: i32, %arg1: i32) -> (i32, i32) {
    %c1_i32 = arith.constant 1 : i32
    %0 = arith.muli %arg0, %c1_i32 : i32
    %1 = arith.addi %0, %arg1 : i32
    %c0_i32 = arith.constant 0 : i32
    %c0_i32_0 = arith.constant 0 : i32
    return %c0_i32, %1 : i32, i32
  }
  func.func @transform_2(%arg0: i32, %arg1: i32) -> (i32, i32) {
    %c0_i32 = arith.constant 0 : i32
    %c0_i32_0 = arith.constant 0 : i32
    %c0_i32_1 = arith.constant 0 : i32
    return %c0_i32, %c0_i32_0 : i32, i32
  }
  func.func @transform_3(%arg0: i32, %arg1: i32) -> (i32, i32, i32) {
    %c0_i32 = arith.constant 0 : i32
    %c0_i32_0 = arith.constant 0 : i32
    %c0_i32_1 = arith.constant 0 : i32
    return %arg0, %c0_i32, %c0_i32_0 : i32, i32, i32
  }
}

</mosaic_0001>

<bundles_post_ra>
// kernel: tpu_custom_call.1
= control target key start
LH: loop header
LB: loop body
LE: loop exit
PB: predicated region body
PF: predicated region fallthrough
CT: control target
= control target key end

     0   :  { %8 = vsyncpa [#allocation4], 0  ;;  %s245_s0 = inlined_call_operand.vmem [shape: f32[24,128], index: 0, kind: input, shape index: {}]   ;;  %s246_s1 = inlined_call_operand.hbm [shape: f32[24,128], index: 1, kind: input, shape index: {}]   ;;  %s247_s2 = inlined_call_operand.vmem [shape: f32[24,1], index: 2, kind: input, shape index: {}]   ;;  %s248_s3 = inlined_call_operand.hbm [shape: f32[1,8,128], index: 3, kind: output, shape index: {}]  }
   0x1   :  { %9 = vsyncpa [#allocation5], 0  ;;  %s187_s12 = smov [#allocation3]  }
   0x2   :  { %s26_s13 = sshll.u32 %s187_s12, 4  ;;  %s27_s13 = int_to_ptr.vmem [resolvable:$true] %s26_s13 }
   0x3   :  { %s151_s14 = scalar_lea.vmem %s27_s13, 384  ;;  %p156_p1 = scmp.lt.s32.totalorder %s27_s13, %s27_s13 }
   0x4   :  { %p152_p0 = scmp.ne.s32.totalorder %s27_s13, %s151_s14  ;;  %p157_p2 = scmp.lt.s32.totalorder %s151_s14, %s151_s14 }
   0x6   :  { %p158_p3 = por %p157_p2, %p156_p1 }
   0x8   :  { %p159_p4 = pnand %p158_p3, %p152_p0 }
   0xa   :  { %162 = shalt.err (!%p159_p4)
}
   0xb   :  { %s188_s15 = smov 128   ;;  %s189_s16 = smov 8  }
   0xc   :  { %32 = dma.hbm_to_vmem [thread:$0]  %s246_s1, 384, %s27_s13, [#allocation4], %s188_s15, %s188_s15, %s189_s16  }
   0xd   :  { %183 = dma.done.wait [#allocation4], 384  }
   0xe   :  { %184 = vsyncadd [#allocation4], 4294966912  ;;  %vm54_vm0 = vcmask 7168   ;;  %v190_v0 = vmov 0.0   ;;  %v58_v1 = vld [vmem:[%s245_s0] sm:$0xff]  ;;  %v61_v2 = vld [vmem:[#allocation3] sm:$0xff] }
   0xf   :  { %55 = vst.msk [vmem:[#allocation2] sm:$0xff] %vm54_vm0, %v190_v0  ;;  %56 = vst.msk [vmem:[#allocation2 + $0x8] sm:$0xff] %vm54_vm0, %v190_v0  ;;  %v59_v3 = vld [vmem:[%s245_s0 + $0x8] sm:$0xff]  ;;  %v64_v4 = vsub.f32 %v58_v1, %v61_v2  ;;  %v62_v5 = vld [vmem:[#allocation3 + $0x8] sm:$0xff] }
  0x10   :  { %57 = vst.msk [vmem:[#allocation2 + $0x10] sm:$0xff] %vm54_vm0, %v190_v0  ;;  %v60_v6 = vld [vmem:[%s245_s0 + $0x10] sm:$0xff]  ;;  %v63_v7 = vld [vmem:[#allocation3 + $0x10] sm:$0xff]  ;;  %v65_v8 = vsub.f32 %v59_v3, %v62_v5  ;;  %v92_v23 = vld [vmem:[%s247_s2] sm:$0xff] }
  0x11   :  { %v66_v9 = vsub.f32 %v60_v6, %v63_v7  ;;  %v70_v10 = vmul.f32 %v64_v4, %v64_v4  ;;  %v94_v24 = vld [vmem:[%s247_s2 + $0x10] sm:$0xff]  ;;  %v93_v26 = vld [vmem:[%s247_s2 + $0x8] sm:$0xff]  ;;  %s191_s2 = smov [#allocation6]  }
  0x12   :  { %v71_v12 = vmul.f32 %v65_v8, %v65_v8  ;;  %s121_s29 = sshll.u32 %s191_s2, 4  ;;  %s122_s29 = int_to_ptr.vmem [resolvable:$true] %s121_s29 }
  0x13   :  { %v72_v11 = vmul.f32 %v66_v9, %v66_v9  ;;  %73 = vadd.xlane.f32.xlu0 %v70_v10  ;;  %s163_s4 = scalar_lea.vmem %s122_s29, 128  ;;  %p168_p6 = scmp.lt.s32.totalorder %s122_s29, %s122_s29 }
  0x14   :  { %p164_p5 = scmp.ne.s32.totalorder %s122_s29, %s163_s4  ;;  %p169_p7 = scmp.lt.s32.totalorder %s163_s4, %s163_s4 }
  0x15   :  { %77 = vadd.xlane.f32.xlu1 %v72_v11 }
  0x16   :  { %v67_v13 = vld [vmem:[#allocation2] sm:$0xff]  ;;  %v68_v18 = vld [vmem:[#allocation2 + $0x8] sm:$0xff]  ;;  %p170_p8 = por %p169_p7, %p168_p6 }
  0x17   :  { %75 = vadd.xlane.f32.xlu0 %v71_v12  ;;  %v69_v14 = vld [vmem:[#allocation2 + $0x10] sm:$0xff] }
  0x18   :  { %p171_p9 = pnand %p170_p8, %p164_p5 }
  0x9c   :  { %v74_v15 = vpop.xlane.xlu0 %73 }
  0x9d   :  { %v79_v16 = vadd.f32 %v74_v15, %v67_v13 }
  0x9e   :  { %v78_v17 = vpop.xlane.xlu1 %77 }
  0x9f   :  { %v81_v19 = vadd.f32 %v78_v17, %v69_v14  ;;  %83 = vst.msk [vmem:[#allocation2] sm:$0xff] %vm54_vm0, %v79_v16 }
  0xa0   :  { %v76_v20 = vpop.xlane.xlu0 %75 }
  0xa1   :  { %85 = vst.msk [vmem:[#allocation2 + $0x10] sm:$0xff] %vm54_vm0, %v81_v19  ;;  %v80_v21 = vadd.f32 %v76_v20, %v68_v18 }
  0xa3   :  { %84 = vst.msk [vmem:[#allocation2 + $0x8] sm:$0xff] %vm54_vm0, %v80_v21 }
  0xa6   :  { %v89_v22 = vld [vmem:[#allocation2] sm:$0xff] }
  0xa7   :  { %v95_v27 = vmul.f32 %v92_v23, %v89_v22 }
  0xa8   :  { %v91_v25 = vld [vmem:[#allocation2 + $0x10] sm:$0xff] }
  0xa9   :  { %v97_v28 = vmul.f32 %v94_v24, %v91_v25  ;;  %v98_v31 = vsel %vm54_vm0, %v95_v27, 0.0 }
  0xaa   :  { %v90_v29 = vld [vmem:[#allocation2 + $0x8] sm:$0xff] }
  0xab   :  { %v96_v30 = vmul.f32 %v93_v26, %v90_v29  ;;  %v101_v33 = vsel %vm54_vm0, %v97_v28, 0.0 }
  0xad   :  { %v99_v32 = vsel %vm54_vm0, %v96_v30, 0.0 }
  0xae   :  { %v100_v34 = vadd.f32 %v99_v32, %v98_v31 }
  0xb0   :  { %v102_v35 = vadd.f32 %v101_v33, %v100_v34 }
  0xb2   :  { %103 = vadd.xlane.f32.xlu1 %v102_v35 }
 0x13b   :  { %v104_v36 = vpop.xlane.xlu1 %103 }
 0x13c   :  { %v105_v37 = vrot.slane %v104_v36, 4 }
 0x13e   :  { %v106_v38 = vadd.f32 %v105_v37, %v104_v36 }
 0x140   :  { %v107_v39 = vrot.slane %v106_v38, 2 }
 0x142   :  { %v108_v40 = vadd.f32 %v107_v39, %v106_v38 }
 0x144   :  { %v109_v41 = vrot.slane %v108_v40, 1 }
 0x146   :  { %v110_v42 = vadd.f32 %v109_v41, %v108_v40 }
 0x148   :  { %136 = vpush %v110_v42 }
 0x179   :  { %s137_s30 = spop %136 }
 0x17a   :  { %v112_v43 = vstv %s137_s30 }
 0x17b   :  { %114 = vst [vmem:[#allocation6] sm:$0xff] %v112_v43 }
 0x17c   :  { %174 = shalt.err (!%p171_p9)
}
 0x17d   :  { %124 = dma.vmem_to_hbm [thread:$0]  %s122_s29, 128, %s248_s3, [#allocation5]  }
 0x17e   :  { %185 = dma.done.wait [#allocation5], 128  }
 0x17f   :  { %186 = vsyncadd [#allocation5], 4294967168 }
 0x180   :  { %128 = vsyncpa [#allocation4], 1 }
 0x181   :  { %129 = vsyncpa [#allocation5], 1 }

</bundles_post_ra>
